<compile_context>
chip_gen: v7x
topology: tpu7x:2x2x1
jax: 0.10.0
libtpu: 0.0.40
codegen_flags: <defaults>
</compile_context>

<pallas_src>
import math
import functools

import jax
import jax.numpy as jnp
from jax import lax
from jax.experimental import pallas as pl
from jax.experimental.pallas import tpu as pltpu


def _round_up(x: int, m: int) -> int:
    return ((x + m - 1) // m) * m


def _sublane_for(dtype) -> int:
    # Sublane packing: 8 rows for 4-byte, 16 for 2-byte, 32 for 1-byte dtypes.
    return {4: 8, 2: 16, 1: 32}.get(jnp.dtype(dtype).itemsize, 8)


def _lora_kernel(x_ref, a_ref, b_ref, bias_ref, o_ref, *, scaling):
    # x_ref:    [tile_n, in_features]
    # a_ref:    [r, in_features]
    # b_ref:    [out_eff, r]
    # bias_ref: [1, out_eff]  (f32)
    # o_ref:    [tile_n, out_eff]
    x = x_ref[...]
    a = a_ref[...]
    b = b_ref[...]

    # (x @ A^T) -> [tile_n, r]; contract last dims directly (no transpose).
    xa = lax.dot_general(
        x, a,
        dimension_numbers=(((1,), (1,)), ((), ())),
        preferred_element_type=jnp.float32,
    )
    # Scale the small [tile_n, r] intermediate (VPU work cut by out/r vs
    # scaling the result).  Mathematically identical to scaling after B.
    xa = xa * scaling
    # Keep the rank-r intermediate in f32 when B is f32 (reference-exact);
    # only narrow it when B itself is a narrower float (e.g. bf16 weights).
    if b.dtype != jnp.float32:
        xa = xa.astype(b.dtype)

    # (xa @ B^T) -> [tile_n, out_eff]
    y = lax.dot_general(
        xa, b,
        dimension_numbers=(((1,), (1,)), ((), ())),
        preferred_element_type=jnp.float32,
    )
    y = y + bias_ref[...]            # bias already f32 (pre-cast in wrapper)
    o_ref[...] = y.astype(o_ref.dtype)


def simple_lora_linear(x, lora_A, lora_B, lora_bias, *, lora_alpha, r,
                       max_tile_n: int = 512, compute_dtype=None):
    """x: [..., in_features] -> [..., out_features]."""
    scaling = float(lora_alpha) / float(r)
    in_features = x.shape[-1]
    out_features = lora_B.shape[0]
    lead_shape = x.shape[:-1]
    n = int(math.prod(lead_shape)) if lead_shape else 1
    out_dtype = x.dtype

    # Degenerate empty-batch case.
    if n == 0:
        return jnp.zeros((*lead_shape, out_features), dtype=out_dtype)

    # Optional bandwidth optimization (halves dominant HBM traffic): cast the
    # matmul operands down (e.g. bf16) while keeping f32 accumulation and an
    # f32 bias add.  Off by default to preserve the module's f32 semantics.
    if compute_dtype is not None:
        x = x.astype(compute_dtype)
        lora_A = lora_A.astype(compute_dtype)
        lora_B = lora_B.astype(compute_dtype)

    x2d = x.reshape(n, in_features)
    bias_f32 = lora_bias.astype(jnp.float32)

    # Lane-dense output padding ONLY when out_features is genuinely narrow;
    # if it's already a multiple of 128 (common LoRA case) or large, skip the
    # pad + slice round-trip and accept a single masked tail vreg per row.
    if out_features % 128 != 0 and out_features < 512:
        out_eff = _round_up(out_features, 128)
        lora_B_k = jnp.pad(lora_B, ((0, out_eff - out_features), (0, 0)))
        bias_k = jnp.pad(bias_f32, (0, out_eff - out_features))
    else:
        out_eff = out_features
        lora_B_k = lora_B
        bias_k = bias_f32
    bias2d = bias_k.reshape(1, out_eff)

    # --- Row tiling, sized from a VMEM budget.  No wrapper-side padding of x:
    #     the ragged last grid block is masked by Pallas.
    x_bytes = jnp.dtype(x.dtype).itemsize
    w_bytes = jnp.dtype(lora_B_k.dtype).itemsize
    o_bytes = jnp.dtype(out_dtype).itemsize
    sublane = _sublane_for(x.dtype)

    resident_bytes = (r * in_features + out_eff * r) * w_bytes + out_eff * 4
    per_row_bytes = (2 * (in_features * x_bytes + out_eff * o_bytes)  # dbl-buffered x/out
                     + (r + out_eff) * 4)                             # f32 intermediates
    tile_budget = 20 * 1024 * 1024   # conservative: fits v5e default & v7x VMEM
    rows_cap = max(sublane, (tile_budget - resident_bytes) // max(per_row_bytes, 1))

    tile_n = min(max_tile_n, rows_cap, _round_up(n, sublane))
    # v7x megacore: ensure >= 2 grid tiles so the "parallel" axis shards
    # across both TensorCores (no-op on single-TC v5e/v6e).
    if n >= 2 * sublane:
        tile_n = min(tile_n, _round_up(pl.cdiv(n, 2), sublane))
    tile_n = max(tile_n, sublane)

    num_tiles = pl.cdiv(n, tile_n)
    tile_n = _round_up(pl.cdiv(n, num_tiles), sublane)   # padding <= 1 sublane group
    num_tiles = pl.cdiv(n, tile_n)
    if num_tiles == 1:
        tile_n = n   # full-extent block: always legal, no padded rows at all

    footprint = (resident_bytes
                 + 2 * tile_n * (in_features * x_bytes + out_eff * o_bytes)
                 + tile_n * (r + out_eff) * 4)
    vmem_limit = int(min(48 * 1024 * 1024,
                         max(16 * 1024 * 1024, 2 * footprint)))

    cost = pl.CostEstimate(
        flops=2 * n * r * (in_features + out_eff),
        transcendentals=0,
        bytes_accessed=(n * in_features * x_bytes
                        + r * in_features * w_bytes
                        + out_eff * r * w_bytes
                        + out_eff * 4
                        + n * out_eff * o_bytes),
    )

    out = pl.pallas_call(
        functools.partial(_lora_kernel, scaling=scaling),
        out_shape=jax.ShapeDtypeStruct((n, out_eff), out_dtype),
        grid_spec=pltpu.PrefetchScalarGridSpec(
            num_scalar_prefetch=0,
            grid=(num_tiles,),
            in_specs=[
                # x: tiled over rows, software-pipelined.
                pl.BlockSpec((tile_n, in_features), lambda i: (i, 0)),
                # A / B / bias: grid-invariant, stay resident in VMEM.
                pl.BlockSpec((r, in_features), lambda i: (0, 0)),
                pl.BlockSpec((out_eff, r), lambda i: (0, 0)),
                pl.BlockSpec((1, out_eff), lambda i: (0, 0)),
            ],
            out_specs=pl.BlockSpec((tile_n, out_eff), lambda i: (i, 0)),
        ),
        compiler_params=pltpu.CompilerParams(
            dimension_semantics=("parallel",),
            vmem_limit_bytes=vmem_limit,
        ),
        cost_estimate=cost,
    )(x2d, lora_A, lora_B_k, bias2d)

    if out_eff != out_features:
        out = out[:, :out_features]
    return out.reshape(*lead_shape, out_features)


if __name__ == "__main__":
    # Module hyper-params (small, consistent with the forward pass).
    batch, seq = 2, 8
    in_features = 32
    out_features = 16
    r = 4
    lora_alpha = 8  # scaling = 2.0

    key = jax.random.PRNGKey(0)
    kx, ka, kb, kbias, kx2 = jax.random.split(key, 5)

    # Deterministic parameter init (shapes from __init__):
    #   lora_A: (r, in_features)  -- kaiming_uniform(a=sqrt(5)) ~ U(-bound, bound)
    #   lora_B: (out_features, r) -- reset_parameters zeros this; use small
    #                                nonzero values so the matmul path is exercised.
    #   lora_bias: (out_features) -- torch.rand -> U[0, 1)
    bound = math.sqrt(1.0 / in_features)
    lora_A = jax.random.uniform(
        ka, (r, in_features), jnp.float32, minval=-bound, maxval=bound
    )
    lora_B = jax.random.uniform(
        kb, (out_features, r), jnp.float32, minval=-0.1, maxval=0.1
    )
    lora_bias = jax.random.uniform(kbias, (out_features,), jnp.float32)

    scaling = lora_alpha / r

    # --- Main case (even N).
    x = jax.random.normal(kx, (batch, seq, in_features), jnp.float32)
    out = simple_lora_linear(
        x, lora_A, lora_B, lora_bias, lora_alpha=lora_alpha, r=r
    )
    out = jax.block_until_ready(out)
    ref = (x @ lora_A.T @ lora_B.T) * scaling + lora_bias
    assert out.shape == (batch, seq, out_features)
    assert jnp.allclose(out, ref, atol=1e-5, rtol=1e-5)

    # --- Ragged-N case (exercises the masked boundary block, no wrapper pad).
    x2 = jax.random.normal(kx2, (3, 7, in_features), jnp.float32)
    out2 = simple_lora_linear(
        x2, lora_A, lora_B, lora_bias, lora_alpha=lora_alpha, r=r
    )
    out2 = jax.block_until_ready(out2)
    ref2 = (x2 @ lora_A.T @ lora_B.T) * scaling + lora_bias
    assert out2.shape == (3, 7, out_features)
    assert jnp.allclose(out2, ref2, atol=1e-5, rtol=1e-5)

    print("KERNEL_OK")
</pallas_src>

<mosaic_0001>
module attributes {stable_mosaic.version = 11 : i64} {
  func.func @_lora_kernel(%arg0: i32, %arg1: memref<8x32xf32, #tpu.memory_space<vmem>>, %arg2: memref<4x32xf32, #tpu.memory_space<vmem>>, %arg3: memref<128x4xf32, #tpu.memory_space<vmem>>, %arg4: memref<1x128xf32, #tpu.memory_space<vmem>>, %arg5: memref<8x128xf32, #tpu.memory_space<vmem>>) attributes {dimension_semantics = [#tpu.dimension_semantics<parallel>], iteration_bounds = array<i64: 2>, scalar_prefetch = 0 : i64, scratch_operands = 0 : i64, tpu.core_type = #tpu.core_type<tc>, window_params = [{transform_indices = @transform_0, window_bounds = array<i64: 8, 32>}, {pipeline_mode = #tpu.pipeline_mode<synchronous>, transform_indices = @transform_1, window_bounds = array<i64: 4, 32>}, {pipeline_mode = #tpu.pipeline_mode<synchronous>, transform_indices = @transform_2, window_bounds = array<i64: 128, 4>}, {pipeline_mode = #tpu.pipeline_mode<synchronous>, transform_indices = @transform_3, window_bounds = array<i64: 1, 128>}, {transform_indices = @transform_4, window_bounds = array<i64: 8, 128>}]} {
    %c0 = arith.constant 0 : index
    %c0_0 = arith.constant 0 : index
    %0 = vector.load %arg1[%c0, %c0_0] : memref<8x32xf32, #tpu.memory_space<vmem>>, vector<8x32xf32>
    %c0_1 = arith.constant 0 : index
    %c0_2 = arith.constant 0 : index
    %1 = vector.load %arg2[%c0_1, %c0_2] : memref<4x32xf32, #tpu.memory_space<vmem>>, vector<4x32xf32>
    %c0_3 = arith.constant 0 : index
    %c0_4 = arith.constant 0 : index
    %2 = vector.load %arg3[%c0_3, %c0_4] : memref<128x4xf32, #tpu.memory_space<vmem>>, vector<128x4xf32>
    %cst = arith.constant dense<0.000000e+00> : vector<8x4xf32>
    %3 = tpu.matmul %0, %1, %cst {dimension_numbers = #tpu.dot_dimension_numbers<[1], [1], [0], [0], [0, 0, 1, 0], [], []>} : vector<8x32xf32>, vector<4x32xf32>, vector<8x4xf32> -> vector<8x4xf32>
    %cst_5 = arith.constant 2.000000e+00 : f32
    %4 = vector.broadcast %cst_5 : f32 to vector<8x4xf32>
    %5 = arith.mulf %3, %4 : vector<8x4xf32>
    %cst_6 = arith.constant dense<0.000000e+00> : vector<8x128xf32>
    %6 = tpu.matmul %5, %2, %cst_6 {dimension_numbers = #tpu.dot_dimension_numbers<[1], [1], [0], [0], [0, 0, 1, 0], [], []>} : vector<8x4xf32>, vector<128x4xf32>, vector<8x128xf32> -> vector<8x128xf32>
    %c0_7 = arith.constant 0 : index
    %c0_8 = arith.constant 0 : index
    %7 = vector.load %arg4[%c0_7, %c0_8] : memref<1x128xf32, #tpu.memory_space<vmem>>, vector<1x128xf32>
    %8 = vector.broadcast %7 : vector<1x128xf32> to vector<8x128xf32>
    %9 = arith.addf %6, %8 : vector<8x128xf32>
    %c0_9 = arith.constant 0 : index
    %c0_10 = arith.constant 0 : index
    %10 = vector.load %arg5[%c0_9, %c0_10] : memref<8x128xf32, #tpu.memory_space<vmem>>, vector<8x128xf32>
    tpu.vector_store %arg5[%c0_9, %c0_10], %9 {strides = array<i32>} : memref<8x128xf32, #tpu.memory_space<vmem>>, vector<8x128xf32>,
    return
  }
  func.func @transform_0(%arg0: i32) -> (i32, i32) {
    %c0_i32 = arith.constant 0 : i32
    %c0_i32_0 = arith.constant 0 : i32
    return %arg0, %c0_i32 : i32, i32
  }
  func.func @transform_1(%arg0: i32) -> (i32, i32) {
    %c0_i32 = arith.constant 0 : i32
    %c0_i32_0 = arith.constant 0 : i32
    %c0_i32_1 = arith.constant 0 : i32
    return %c0_i32, %c0_i32_0 : i32, i32
  }
  func.func @transform_2(%arg0: i32) -> (i32, i32) {
    %c0_i32 = arith.constant 0 : i32
    %c0_i32_0 = arith.constant 0 : i32
    %c0_i32_1 = arith.constant 0 : i32
    return %c0_i32, %c0_i32_0 : i32, i32
  }
  func.func @transform_3(%arg0: i32) -> (i32, i32) {
    %c0_i32 = arith.constant 0 : i32
    %c0_i32_0 = arith.constant 0 : i32
    %c0_i32_1 = arith.constant 0 : i32
    return %c0_i32, %c0_i32_0 : i32, i32
  }
  func.func @transform_4(%arg0: i32) -> (i32, i32) {
    %c0_i32 = arith.constant 0 : i32
    %c0_i32_0 = arith.constant 0 : i32
    return %arg0, %c0_i32 : i32, i32
  }
}

</mosaic_0001>

<bundles_post_ra>
// kernel: tpu_custom_call.1
= control target key start
LH: loop header
LB: loop body
LE: loop exit
PB: predicated region body
PF: predicated region fallthrough
CT: control target
= control target key end

     0   :  { %9 = vsyncpa [#allocation3], 0  ;;  %s927_s0 = inlined_call_operand.vmem [shape: f32[16,32], index: 0, kind: input, shape index: {}]   ;;  %s928_s1 = inlined_call_operand.vmem [shape: f32[4,32], index: 1, kind: input, shape index: {}]   ;;  %s929_s2 = inlined_call_operand.vmem [shape: f32[128,4], index: 2, kind: input, shape index: {}]   ;;  %s930_s3 = inlined_call_operand.vmem [shape: f32[1,128], index: 3, kind: input, shape index: {}]   ;;  %s931_s4 = inlined_call_operand.hbm [shape: f32[16,128], index: 4, kind: output, shape index: {}]  }
   0x1   :  { %11 = vsyncpa [#allocation3 + $0x1], 0  ;;  %s748_s15 = smov 0   ;;  %s750_s16 = smov 0  }
   0x2   :  { %s752_s17 = smov 0   ;;  %s754_s18 = smov 0  }
   0x3 LB: > { %s769_s19 = sadd.s32 4294967295, %s717_s18   ;;  %s492_s20 = sadd.s32 4294967294, %s717_s18   ;;  %s717_s18 = sphi %s754_s18, %s939_s18   ;;  %s713_s17 = sphi %s752_s17, %s938_s17   ;;  %s709_s16 = sphi %s750_s16, %s937_s16   ;;  %s705_s15 = sphi %s748_s15, %s936_s15  }
   0x4   : > { %s773_s21 = sadd.s32 1, %s717_s18   ;;  %s113_s22 = sadd.s32 1, %s713_s17 }
   0x5   : > { %s110_s23 = ssub.s32 %s717_s18, %s773_s21  ;;  %p123_p0 = scmp.ne.s32.totalorder %s713_s17, %s709_s16 }
   0x6   : > { %p111_p1 = scmp.eq.s32.totalorder %s110_s23, 0  ;;  %p124_p2 = scmp.eq.s32.totalorder %s769_s19, 1 }
   0x7   : > { %p129_p3 = scmp.ne.s32.totalorder %s709_s16, %s705_s15  ;;  %p130_p4 = scmp.eq.s32.totalorder %s492_s20, 1 }
   0x8   : > { %s784_s24 = scalar_select %p111_p1, %s713_s17, %s113_s22  }
   0x9   : > { %p786_p5 = por %p124_p2, %p123_p0  ;;  %p790_p6 = por %p130_p4, %p129_p3 }
   0xa   : > { %p495_p7 = scmp.ge.s32.totalorder %s717_s18, 1  ;;  %p164_p8 = scmp.lt.s32.totalorder %s717_s18, 3 }
   0xc   : > { %p165_p9 = pnand %p495_p7, %p164_p8 }
   0xd   : > { %v194_v0 = vld [vmem:[%s928_s1] sm:$0xf] (!%p165_p9)  ;;  %vm211_vm0 = vcmask (!%p165_p9), 261120   ;;  %p189_p10 = scmp.lt.s32.totalorder (!%p165_p9), %s769_s19, 1  ;;  %v719_v1 = vmov (!%p165_p9), 0.0   ;;  %vm720_vm1 = vmmov (!%p165_p9), 0  }
   0xe   : > { %168 = sbr.rel (%p165_p9) target bundleno = 468 (0x1d4), region = 36  ;;  %541 = vmatprep.subr.mxu0 (!%p165_p9), %v719_v1  ;;  %543 = vmatprep.mubr.msk.f32.mxu0 (!%p165_p9), %vm720_vm1, %v719_v1  ;;  %v195_v2 = vld [vmem:[%s929_s2] sm:$0xff] (!%p165_p9)  ;;  %v196_v3 = vld [vmem:[%s929_s2 + $0x8] sm:$0xff] (!%p165_p9)  ;;  %vm296_vm2 = vcmask (!%p165_p9), 31744   ;;  %v721_v4 = vmov (!%p165_p9), 0.0|0.0   ;;  %v197_v7 = vld [vmem:[%s929_s2 + $0x10] sm:$0xff] (!%p165_p9) }
   0xf   : > { %542 = vmatpush3.xpose.msk.msra.mxu0 (!%p165_p9), %vm211_vm0, %v194_v0  ;;  %581 = vmatprep.subr.bf16.mxu1 (!%p165_p9), %v721_v4  ;;  %v582_v5 = vpack.c.bf16 (!%p165_p9), %v196_v3, %v195_v2  ;;  %vm810_vm3 = vmpackc.low (!%p165_p9), %vm296_vm2, %vm296_vm2  ;;  %v198_v8 = vld [vmem:[%s929_s2 + $0x18] sm:$0xff] (!%p165_p9)  ;;  %v199_v11 = vld [vmem:[%s929_s2 + $0x20] sm:$0xff] (!%p165_p9)  ;;  %s186_s6 = sand.u32 (!%p165_p9), 1, %s709_s16   ;;  %s519_s10 = sshll.u32 (!%p165_p9), %s769_s19, 7 }
  0x10   : > { %578 = vmatprep.mubr.msk.f32.mxu1 (!%p165_p9), %vm720_vm1, %v719_v1  ;;  %v586_v10 = vpack.c.bf16 (!%p165_p9), %v198_v8, %v197_v7  ;;  %v200_v12 = vld [vmem:[%s929_s2 + $0x28] sm:$0xff] (!%p165_p9)  ;;  %v201_v14 = vld [vmem:[%s929_s2 + $0x30] sm:$0xff] (!%p165_p9)  ;;  %v202_v15 = vld [vmem:[%s929_s2 + $0x38] sm:$0xff] (!%p165_p9)  ;;  %s885_s20 = scalar_lea.hbm (!%p165_p9), %s931_s4, %s519_s10  ;;  %s420_s22 = scalar_lea.sflag (!%p165_p9), [#allocation3], %s186_s6 }
  0x11   : > { %584 = vmatpush3.bf16.xpose.msk.msra.mxu1 (!%p165_p9), %vm810_vm3, %v582_v5  ;;  %v590_v13 = vpack.c.bf16 (!%p165_p9), %v200_v12, %v199_v11  ;;  %v594_v16 = vpack.c.bf16 (!%p165_p9), %v202_v15, %v201_v14  ;;  %v203_v17 = vld [vmem:[%s929_s2 + $0x40] sm:$0xff] (!%p165_p9)  ;;  %v204_v18 = vld [vmem:[%s929_s2 + $0x48] sm:$0xff] (!%p165_p9)  ;;  %v205_v20 = vld [vmem:[%s929_s2 + $0x50] sm:$0xff] (!%p165_p9) }
  0x12   : > { %585 = vmatprep.subr.bf16.mxu1 (!%p165_p9), %v721_v4  ;;  %v598_v19 = vpack.c.bf16 (!%p165_p9), %v204_v18, %v203_v17  ;;  %v206_v21 = vld [vmem:[%s929_s2 + $0x58] sm:$0xff] (!%p165_p9)  ;;  %v207_v23 = vld [vmem:[%s929_s2 + $0x60] sm:$0xff] (!%p165_p9)  ;;  %v208_v24 = vld [vmem:[%s929_s2 + $0x68] sm:$0xff] (!%p165_p9) }
  0x13   : > { %v602_v22 = vpack.c.bf16 (!%p165_p9), %v206_v21, %v205_v20  ;;  %v606_v25 = vpack.c.bf16 (!%p165_p9), %v208_v24, %v207_v23  ;;  %v209_v26 = vld [vmem:[%s929_s2 + $0x70] sm:$0xff] (!%p165_p9)  ;;  %v210_v27 = vld [vmem:[%s929_s2 + $0x78] sm:$0xff] (!%p165_p9)  ;;  %v500_v32 = vld [vmem:[%s930_s3] ss:$0 sm:$0xff] (!%p165_p9) }
  0x14   : > { %v610_v28 = vpack.c.bf16 (!%p165_p9), %v210_v27, %v209_v26 }
  0x15   : > { %s190_s7 = scalar_select %p189_p10, %s769_s19, 1 }
  0x16   : > { %s722_s19 = smov [#allocation2]  }
  0x17   : > { %s497_s8 = sshll.u32 %s190_s7, 3  ;;  %s496_s7 = sshll.u32 %s186_s6, 3 }
  0x18   : > { %s192_s11 = scalar_lea.vmem %s927_s0, %s497_s8  ;;  %s659_s27 = sshll.u32 %s722_s19, 4  ;;  %s660_s27 = int_to_ptr.vmem [resolvable:$false] %s659_s27 }
  0x19   : > { %v193_v9 = vld [vmem:[%s192_s11] sm:$0xff]  ;;  %588 = vmatpush3.bf16.xpose.msk.msra.mxu1 %vm810_vm3, %v586_v10  ;;  %s188_s11 = scalar_lea.vmem [#allocation2], %s496_s7  ;;  %s661_s28 = scalar_lea.vmem %s660_s27, 256 }
  0x1a   : > { %544 = vmatmul.mubr.msk.f32.vlgmr.msra.gmra.mrb[0].mxu0 %vm211_vm0, %v193_v9  ;;  %589 = vmatprep.subr.bf16.mxu1 %v721_v4  ;;  %s433_s12 = sshll.u32 %s188_s11, 4  ;;  %s887_s12 = int_to_ptr.vmem [resolvable:$true] %s433_s12 }
  0x1b   : > { %s655_s23 = scalar_lea.vmem %s887_s12, 128  ;;  %p662_p0 = scmp.lt.s32.totalorder %s887_s12, %s660_s27 }
  0x1c   : > { %p656_p11 = scmp.ne.s32.totalorder %s887_s12, %s655_s23  ;;  %p663_p1 = scmp.lt.s32.totalorder %s661_s28, %s655_s23 }
  0x1e   : > { %p657_p12 = pnand %p656_p11, %p786_p5  ;;  %p664_p2 = por %p663_p1, %p662_p0 }
  0x20   : > { %p658_p13 = pneg %p657_p12 }
  0x21   : > { %592 = vmatpush3.bf16.xpose.msk.msra.mxu1 %vm810_vm3, %v590_v13 }
  0x22   : > { %593 = vmatprep.subr.bf16.mxu1 %v721_v4  ;;  %p665_p3 = pnand %p664_p2, %p658_p13 }
  0x29   : > { %596 = vmatpush3.bf16.xpose.msk.msra.mxu1 %vm810_vm3, %v594_v16 }
  0x2a   : > { %597 = vmatprep.subr.bf16.mxu1 %v721_v4 }
  0x31   : > { %600 = vmatpush3.bf16.xpose.msk.msra.mxu1 %vm810_vm3, %v598_v19 }
  0x32   : > { %601 = vmatprep.subr.bf16.mxu1 %v721_v4 }
  0x39   : > { %604 = vmatpush3.bf16.xpose.msk.msra.mxu1 %vm810_vm3, %v602_v22 }
  0x3a   : > { %605 = vmatprep.subr.bf16.mxu1 %v721_v4 }
  0x41   : > { %608 = vmatpush3.bf16.xpose.msk.msra.mxu1 %vm810_vm3, %v606_v25 }
  0x42   : > { %609 = vmatprep.subr.bf16.mxu1 %v721_v4 }
  0x49   : > { %612 = vmatpush3.bf16.xpose.msk.msra.mxu1 %vm810_vm3, %v610_v28 }
  0xed   : > { %v284_v29 = vpop.f32.mrb[0].mxu0 }
  0xee   : > { %v288_v30 = vmul.f32 2.0, %v284_v29  ;;  %v545_v31 = vpop.f32.mrb[1].mxu0 }
  0xf0   : > { %579 = vmatmul.mubr.msk.f32.vlgmr.msra.gmra.mrb[0].mxu1 %vm296_vm2, %v288_v30 }
 0x1c3   : > { %v414_v33 = vpop.f32.mrb[0].mxu1 }
 0x1c4   : > { %v415_v34 = vadd.f32 %v500_v32, %v414_v33  ;;  %v580_v35 = vpop.f32.mrb[1].mxu1 }
 0x1c6   : > { %418 = vst [vmem:[%s188_s11] sm:$0xff] %v415_v34 }
 0x1c7   : > { %668 = shalt.err (!%p665_p3)
}
 0x1c8   : > { %s669_s29 = scalar_lea.hbm %s885_s20, 128  ;;  %s673_s6 = scalar_lea.hbm %s931_s4, 256 }
 0x1c9   : > { %p670_p4 = scmp.ne.s32.totalorder %s885_s20, %s669_s29  ;;  %p674_p9 = scmp.lt.u32.totalorder %s885_s20, %s931_s4 }
 0x1ca   : > { %p675_p10 = scmp.lt.u32.totalorder %s673_s6, %s669_s29  ;;  %p677_p12 = scmp.lt.u32.totalorder %s669_s29, %s885_s20 }
 0x1cb   : > { %p671_p7 = pnand %p670_p4, %p786_p5 }
 0x1cc   : > { %p676_p11 = por %p675_p10, %p674_p9 }
 0x1cd   : > { %p672_p8 = pneg %p671_p7 }
 0x1ce   : > { %p678_p13 = por %p677_p12, %p676_p11 }
 0x1d0   : > { %p679_p0 = pnand %p678_p13, %p672_p8 }
 0x1d2   : > { %682 = shalt.err (!%p679_p0)
}
 0x1d3   : > { %613 = dma.vmem_to_hbm [thread:$0]  (%p786_p5), %s887_s12, 128, %s885_s20, %s420_s22  }
 0x1d4 PF: > { %p619_p1 = scmp.ge.s32.totalorder %s717_s18, 2  ;;  %s445_s9 = sand.u32 1, %s705_s15  }
 0x1d5   : > { %s446_s10 = scalar_lea.sflag [#allocation3], %s445_s9 }
 0x1d6   : > { %p616_p2 = pnand %p619_p1, %p790_p6 }
 0x1d8   : > { %700 = dma.done.wait (!%p616_p2), %s446_s10, 128  }
 0x1d9   : > { %702 = vsyncadd (!%p616_p2), %s446_s10, 4294967168  ;;  %p14_p3 = scmp.ge.s32.totalorder %s773_s21, 4   ;;  %s936_s15 = smov %s709_s16 }
 0x1da   : > { %s937_s16 = smov %s713_s17  ;;  %s938_s17 = smov %s784_s24 }
 0x1db   : > { %s939_s18 = smov %s773_s21  ;;  %16 = sbr.rel (!%p14_p3) target bundleno = 3 (0x3), region = 71 }
 0x1e2   :  { %451 = vsyncpa [#allocation3], 1 }
 0x1e3   :  { %453 = vsyncpa [#allocation3 + $0x1], 1 }

</bundles_post_ra>
